<compile_context>
chip_gen: v7x
topology: tpu7x:2x2x1
jax: 0.10.0
libtpu: 0.0.40
codegen_flags: <defaults>
</compile_context>

<pallas_src>
import functools
import math

import jax
import jax.numpy as jnp
from jax import lax
from jax.experimental import pallas as pl
from jax.experimental.pallas import tpu as pltpu

_MiB = 1024 * 1024
_SQRT1_2 = 1.0 / math.sqrt(2.0)
_GELU_TANH_C = math.sqrt(2.0 / math.pi)


def _round_up(x, m):
    return ((x + m - 1) // m) * m


def _round_down(x, m):
    return (x // m) * m


def _cdiv(a, b):
    return -(-a // b)


def _tpu_profile():
    """Generation-aware VMEM capacity / tiling targets (with safe fallbacks)."""
    vmem = None
    try:
        vmem = int(pltpu.get_tpu_info().vmem_capacity_bytes)
    except Exception:
        vmem = None
    kind = ""
    try:
        kind = jax.devices()[0].device_kind.lower()
    except Exception:
        pass
    if "v6" in kind:
        gen, tm_target, align, cores, dflt = "v6e", 1024, 256, 1, 128 * _MiB
    elif "v5 lite" in kind or "v5e" in kind:
        gen, tm_target, align, cores, dflt = "v5e", 256, 128, 1, 128 * _MiB
    elif "v5" in kind:  # v5p etc.
        gen, tm_target, align, cores, dflt = "v5", 512, 256, 1, 128 * _MiB
    elif "7" in kind:   # v7x: 64 MiB per-TC VMEM, 2 TensorCores
        gen, tm_target, align, cores, dflt = "v7x", 512, 256, 2, 64 * _MiB
    else:
        gen, tm_target, align, cores, dflt = "unknown", 512, 256, 1, 64 * _MiB
    if vmem is None:
        vmem = dflt
    return dict(gen=gen, vmem=vmem, tm_target=tm_target, align=align, cores=cores)


def _largest_aligned_divisor(total, target, align):
    """Largest multiple of `align` that divides `total` and is <= target (or None)."""
    best = None
    t = align
    while t <= min(target, total):
        if total % t == 0:
            best = t
        t += align
    return best


def prepare_mlp_params(w1, b1, w2, b2, *, compute_dtype=jnp.bfloat16,
                       tile_h=512, force_mode=None):
    """One-time parameter prep (call OUTSIDE the per-forward hot path).

    Casts weights to the MXU compute dtype once, decides whether both weight
    matrices can stay VMEM-resident for the whole kernel, and for the streamed
    path pre-blocks W1 into [H//th, D, th] contiguous slabs so each per-step
    weight DMA is a single dense chunk.
    """
    D, H = w1.shape
    assert w2.shape == (H, D) and b1.shape == (H,) and b2.shape == (D,)
    prof = _tpu_profile()
    cbytes = jnp.dtype(compute_dtype).itemsize
    budget = int(0.78 * prof["vmem"])

    # Conservative: assume the pipeline allocates 2 buffers per input spec even
    # for grid-invariant blocks.
    resident_bytes = 2 * (D * H + H * D) * cbytes
    resident = resident_bytes <= int(0.45 * budget)
    if force_mode == "resident":
        resident = True
    elif force_mode == "streamed":
        resident = False

    b1p = b1.reshape(1, H).astype(jnp.float32)
    b2p = b2.reshape(1, D).astype(jnp.float32)

    if resident:
        return dict(mode="resident", prof=prof, D=D, H=H, th=H,
                    compute_dtype=compute_dtype,
                    w1=w1.astype(compute_dtype),          # (D, H)
                    w2=w2.astype(compute_dtype),          # (H, D)
                    b1=b1p, b2=b2p)

    # Streamed path: H tile whose double-buffered W1/W2 slabs use <= ~35% of
    # the budget, 128-aligned and dividing H.
    th_cap = max(128, budget * 35 // 100 // max(1, 4 * D * cbytes))
    th = _largest_aligned_divisor(H, min(tile_h, th_cap), 128)
    if th is None:
        th = H                                            # awkward H: one slab
    hb = H // th
    # Pre-block W1 (D, H) -> (H//th, D, th): slab g == W1[:, g*th:(g+1)*th],
    # stored contiguously (one dense DMA per step; fixes the strided-slice DMA).
    w1_blocked = jnp.transpose(
        w1.astype(compute_dtype).reshape(D, hb, th), (1, 0, 2))
    return dict(mode="streamed", prof=prof, D=D, H=H, th=th,
                compute_dtype=compute_dtype,
                w1=w1_blocked,                            # (H//th, D, th)
                w2=w2.astype(compute_dtype),              # (H, D)
                b1=b1p, b2=b2p)


def _gelu(h, exact):
    if exact:
        # nn.GELU() default: 0.5 * h * (1 + erf(h / sqrt(2)))
        return 0.5 * h * (1.0 + lax.erf(h * _SQRT1_2))
    # tanh approximation (cheaper: 1 EUP op + a few VPU mults)
    return 0.5 * h * (1.0 + jnp.tanh(_GELU_TANH_C * (h + 0.044715 * h * h * h)))


def _mlp_resident_kernel(x_ref, w1_ref, b1_ref, w2_ref, b2_ref, o_ref, *,
                         gelu_exact):
    # Whole MLP for one token tile; both weight matrices stay VMEM-resident
    # across the (parallel) token grid (constant block index -> DMA'd once).
    x = x_ref[...].astype(w1_ref.dtype)
    h = jnp.dot(x, w1_ref[...], preferred_element_type=jnp.float32) + b1_ref[...]
    h = _gelu(h, gelu_exact)
    y = jnp.dot(h.astype(w2_ref.dtype), w2_ref[...],
                preferred_element_type=jnp.float32) + b2_ref[...]
    # Dropout: identity (eval mode / p = 0).
    o_ref[...] = y.astype(o_ref.dtype)


def _mlp_streamed_kernel(x_ref, w1_ref, b1_ref, w2_ref, b2_ref, o_ref,
                         acc_ref=None, *, gelu_exact):
    # grid = (token tiles, hidden tiles); hidden axis is the inner reduction.
    # The output block is resident across the hidden axis, so for f32 outputs
    # we accumulate straight into it (no extra scratch); otherwise acc_ref is
    # an f32 VMEM scratch.
    h_idx = pl.program_id(1)
    acc = o_ref if acc_ref is None else acc_ref

    @pl.when(h_idx == 0)
    def _init():
        acc[...] = jnp.zeros_like(acc)

    x = x_ref[...].astype(w1_ref.dtype)
    h = jnp.dot(x, w1_ref[...], preferred_element_type=jnp.float32) + b1_ref[...]
    h = _gelu(h, gelu_exact)
    acc[...] += jnp.dot(h.astype(w2_ref.dtype), w2_ref[...],
                        preferred_element_type=jnp.float32)

    @pl.when(h_idx == pl.num_programs(1) - 1)
    def _finalize():
        # b2 added exactly once; dropout is identity (eval mode / p = 0).
        o_ref[...] = (acc[...] + b2_ref[...]).astype(o_ref.dtype)


def mlp_pallas(x, params, *, tile_m=None, gelu_exact=True):
    """Forward: dropout(c_proj(gelu(c_fc(x)))), dropout in eval mode.

    x: [B, T, D] (any float dtype); params: output of prepare_mlp_params.
    NOTE: for real benchmarking D should be a multiple of 128 (lane-dense
    stores); tiny demo D lowers to masked partial stores.
    """
    B, T, D = x.shape
    assert D == params["D"]
    H, th = params["H"], params["th"]
    prof = params["prof"]
    cdtype = params["compute_dtype"]
    cbytes = jnp.dtype(cdtype).itemsize
    xbytes = jnp.dtype(x.dtype).itemsize
    out_dtype = x.dtype
    obytes = jnp.dtype(out_dtype).itemsize
    M = B * T

    vmem_cap = prof["vmem"]
    budget = int(0.78 * vmem_cap)
    align = prof["align"]
    target = prof["tm_target"] if tile_m is None else tile_m

    resident = params["mode"] == "resident"
    use_scratch = (not resident) and out_dtype != jnp.float32

    if resident:
        fixed = 2 * (D * H + H * D) * cbytes + 2 * (H + D) * 4
        per_row = 2 * D * xbytes + 2 * D * obytes + 2 * H * 4
    else:
        fixed = 2 * (D * th + th * D) * cbytes + 2 * (th + D) * 4
        per_row = (2 * D * xbytes + 2 * D * obytes + 2 * th * 4
                   + (4 * D if use_scratch else 0))

    # Token tile: as large as the budget/target allows, min 16 (bf16 sublane
    # packing), 128/256-aligned; M is padded instead of using odd tile sizes.
    tm_fit = max(16, (budget - fixed) // per_row)
    tm = max(16, min(target, tm_fit))
    if M <= tm:
        tm = max(16, _round_up(M, 16))
    else:
        tm = _round_down(tm, align) if tm >= align else _round_down(tm, 16)
        tm = max(16, tm)
        # v7x: both TensorCores should get token tiles when M is big enough.
        if prof["cores"] >= 2 and M >= 2 * align and _cdiv(M, tm) < 2:
            tm = _round_up(_cdiv(M, 2), align)

    Mp = _round_up(M, tm)
    x2 = x.reshape(M, D)
    if Mp != M:
        x2 = jnp.pad(x2, ((0, Mp - M), (0, 0)))

    vmem_need = fixed + tm * per_row
    vmem_limit = int(min(int(0.85 * vmem_cap), max(32 * _MiB, 2 * vmem_need)))
    vmem_limit = max(vmem_limit, vmem_need + 2 * _MiB)
    vmem_limit = min(vmem_limit, int(0.9 * vmem_cap))

    n_token_tiles = Mp // tm
    kernel = functools.partial(
        _mlp_resident_kernel if resident else _mlp_streamed_kernel,
        gelu_exact=gelu_exact)

    if resident:
        grid = (n_token_tiles,)
        in_specs = [
            pl.BlockSpec((tm, D), lambda i: (i, 0)),      # x tile
            pl.BlockSpec((D, H), lambda i: (0, 0)),       # W1 (resident)
            pl.BlockSpec((1, H), lambda i: (0, 0)),       # b1 (resident)
            pl.BlockSpec((H, D), lambda i: (0, 0)),       # W2 (resident)
            pl.BlockSpec((1, D), lambda i: (0, 0)),       # b2 (resident)
        ]
        out_specs = pl.BlockSpec((tm, D), lambda i: (i, 0))
        scratch_shapes = []
        dim_sem = ("parallel",)
        weight_passes = 1
    else:
        grid = (n_token_tiles, H // th)
        in_specs = [
            pl.BlockSpec((tm, D), lambda i, h: (i, 0)),                    # x tile
            pl.BlockSpec((pl.Squeezed(), D, th), lambda i, h: (h, 0, 0)),  # W1 slab
            pl.BlockSpec((1, th), lambda i, h: (0, h)),                    # b1 slice
            pl.BlockSpec((th, D), lambda i, h: (h, 0)),                    # W2 slab
            pl.BlockSpec((1, D), lambda i, h: (0, 0)),                     # b2
        ]
        out_specs = pl.BlockSpec((tm, D), lambda i, h: (i, 0))
        scratch_shapes = ([pltpu.VMEM((tm, D), jnp.float32)]
                          if use_scratch else [])
        dim_sem = ("parallel", "arbitrary")
        weight_passes = n_token_tiles

    cost = pl.CostEstimate(
        flops=4 * Mp * D * H,                 # two matmuls: 2*M*D*H each
        transcendentals=Mp * H,               # one erf/tanh per hidden act
        bytes_accessed=(Mp * D * (xbytes + obytes)
                        + weight_passes * 2 * D * H * cbytes
                        + weight_passes * (H + D) * 4),
    )

    out2 = pl.pallas_call(
        kernel,
        out_shape=jax.ShapeDtypeStruct((Mp, D), out_dtype),
        grid_spec=pltpu.PrefetchScalarGridSpec(
            num_scalar_prefetch=0,
            grid=grid,
            in_specs=in_specs,
            out_specs=out_specs,
            scratch_shapes=scratch_shapes,
        ),
        compiler_params=pltpu.CompilerParams(
            dimension_semantics=dim_sem,
            vmem_limit_bytes=vmem_limit,
        ),
        cost_estimate=cost,
    )(x2, params["w1"], params["b1"], params["w2"], params["b2"])

    if Mp != M:
        out2 = out2[:M]
    return out2.reshape(B, T, D)


def mlp_reference(x, w1, b1, w2, b2):
    h = jnp.dot(x, w1, precision=lax.Precision.HIGHEST) + b1
    h = 0.5 * h * (1.0 + lax.erf(h * _SQRT1_2))
    return jnp.dot(h, w2, precision=lax.Precision.HIGHEST) + b2


if __name__ == "__main__":
    # Small GPT-ish config: batch=2, seq=8, n_embd=64 -> hidden = 4*64 = 256.
    B, T, D = 2, 8, 64
    H = 4 * D

    key = jax.random.PRNGKey(0)
    kx, k1, k2, k3, k4 = jax.random.split(key, 5)

    x = jax.random.normal(kx, (B, T, D), dtype=jnp.float32)
    # Deterministic parameter init (roughly matching nn.Linear scale).
    w1 = jax.random.normal(k1, (D, H), dtype=jnp.float32) * (1.0 / math.sqrt(D))
    b1 = jax.random.normal(k2, (H,), dtype=jnp.float32) * 0.01
    w2 = jax.random.normal(k3, (H, D), dtype=jnp.float32) * (1.0 / math.sqrt(H))
    b2 = jax.random.normal(k4, (D,), dtype=jnp.float32) * 0.01

    ref = mlp_reference(x, w1, b1, w2, b2)

    # (a) Resident-weight path (bf16 MXU inputs, f32 accumulation, exact GELU).
    params_res = prepare_mlp_params(w1, b1, w2, b2)        # one-time prep/cast
    out_res = jax.block_until_ready(mlp_pallas(x, params_res))
    assert out_res.shape == (B, T, D)
    assert jnp.allclose(out_res, ref, atol=5e-2, rtol=5e-2), "resident mismatch"

    # (b) Streamed-weight path (forced, 2 hidden tiles) with tanh-approx GELU.
    params_str = prepare_mlp_params(w1, b1, w2, b2, tile_h=128,
                                    force_mode="streamed")
    out_str = jax.block_until_ready(mlp_pallas(x, params_str, gelu_exact=False))
    assert jnp.allclose(out_str, ref, atol=5e-2, rtol=5e-2), "streamed mismatch"

    # (c) Strict-parity path: f32 compute end to end.
    params_f32 = prepare_mlp_params(w1, b1, w2, b2, compute_dtype=jnp.float32)
    out_f32 = jax.block_until_ready(mlp_pallas(x, params_f32))
    assert jnp.allclose(out_f32, ref, atol=2e-3, rtol=2e-3), "f32 mismatch"

    # TODO(synk): nn.Dropout in training mode (stochastic masking via
    # pltpu.prng_random_bits) is intentionally not implemented; this forward
    # matches eval mode / dropout p = 0.

    print("KERNEL_OK")
</pallas_src>

<mosaic_0001>
module attributes {stable_mosaic.version = 11 : i64} {
  func.func @_mlp_resident_kernel(%arg0: i32, %arg1: memref<16x64xf32, #tpu.memory_space<vmem>>, %arg2: memref<64x256xbf16, #tpu.memory_space<vmem>>, %arg3: memref<1x256xf32, #tpu.memory_space<vmem>>, %arg4: memref<256x64xbf16, #tpu.memory_space<vmem>>, %arg5: memref<1x64xf32, #tpu.memory_space<vmem>>, %arg6: memref<16x64xf32, #tpu.memory_space<vmem>>) attributes {dimension_semantics = [#tpu.dimension_semantics<parallel>], iteration_bounds = array<i64: 1>, scalar_prefetch = 0 : i64, scratch_operands = 0 : i64, tpu.core_type = #tpu.core_type<tc>, window_params = [{transform_indices = @transform_0, window_bounds = array<i64: 16, 64>}, {pipeline_mode = #tpu.pipeline_mode<synchronous>, transform_indices = @transform_1, window_bounds = array<i64: 64, 256>}, {pipeline_mode = #tpu.pipeline_mode<synchronous>, transform_indices = @transform_2, window_bounds = array<i64: 1, 256>}, {pipeline_mode = #tpu.pipeline_mode<synchronous>, transform_indices = @transform_3, window_bounds = array<i64: 256, 64>}, {pipeline_mode = #tpu.pipeline_mode<synchronous>, transform_indices = @transform_4, window_bounds = array<i64: 1, 64>}, {transform_indices = @transform_5, window_bounds = array<i64: 16, 64>}]} {
    %c0 = arith.constant 0 : index
    %c0_0 = arith.constant 0 : index
    %0 = vector.load %arg1[%c0, %c0_0] : memref<16x64xf32, #tpu.memory_space<vmem>>, vector<16x64xf32>
    %1 = arith.truncf %0 : vector<16x64xf32> to vector<16x64xbf16>
    %c0_1 = arith.constant 0 : index
    %c0_2 = arith.constant 0 : index
    %2 = vector.load %arg2[%c0_1, %c0_2] : memref<64x256xbf16, #tpu.memory_space<vmem>>, vector<64x256xbf16>
    %cst = arith.constant dense<0.000000e+00> : vector<16x256xf32>
    %3 = tpu.matmul %1, %2, %cst {dimension_numbers = #tpu.dot_dimension_numbers<[1], [0], [0], [1], [0, 0, 1, 1], [], []>} : vector<16x64xbf16>, vector<64x256xbf16>, vector<16x256xf32> -> vector<16x256xf32>
    %c0_3 = arith.constant 0 : index
    %c0_4 = arith.constant 0 : index
    %4 = vector.load %arg3[%c0_3, %c0_4] : memref<1x256xf32, #tpu.memory_space<vmem>>, vector<1x256xf32>
    %5 = vector.broadcast %4 : vector<1x256xf32> to vector<16x256xf32>
    %6 = arith.addf %3, %5 : vector<16x256xf32>
    %cst_5 = arith.constant 5.000000e-01 : f32
    %7 = vector.broadcast %cst_5 : f32 to vector<16x256xf32>
    %8 = arith.mulf %7, %6 : vector<16x256xf32>
    %cst_6 = arith.constant 0.707106769 : f32
    %9 = vector.broadcast %cst_6 : f32 to vector<16x256xf32>
    %10 = arith.mulf %6, %9 : vector<16x256xf32>
    %11 = math.erf %10 : vector<16x256xf32>
    %cst_7 = arith.constant 1.000000e+00 : f32
    %12 = vector.broadcast %cst_7 : f32 to vector<16x256xf32>
    %13 = arith.addf %12, %11 : vector<16x256xf32>
    %14 = arith.mulf %8, %13 : vector<16x256xf32>
    %15 = arith.truncf %14 : vector<16x256xf32> to vector<16x256xbf16>
    %c0_8 = arith.constant 0 : index
    %c0_9 = arith.constant 0 : index
    %16 = vector.load %arg4[%c0_8, %c0_9] : memref<256x64xbf16, #tpu.memory_space<vmem>>, vector<256x64xbf16>
    %cst_10 = arith.constant dense<0.000000e+00> : vector<16x64xf32>
    %17 = tpu.matmul %15, %16, %cst_10 {dimension_numbers = #tpu.dot_dimension_numbers<[1], [0], [0], [1], [0, 0, 1, 1], [], []>} : vector<16x256xbf16>, vector<256x64xbf16>, vector<16x64xf32> -> vector<16x64xf32>
    %c0_11 = arith.constant 0 : index
    %c0_12 = arith.constant 0 : index
    %18 = vector.load %arg5[%c0_11, %c0_12] : memref<1x64xf32, #tpu.memory_space<vmem>>, vector<1x64xf32>
    %19 = vector.broadcast %18 : vector<1x64xf32> to vector<16x64xf32>
    %20 = arith.addf %17, %19 : vector<16x64xf32>
    %c0_13 = arith.constant 0 : index
    %c0_14 = arith.constant 0 : index
    %21 = vector.load %arg6[%c0_13, %c0_14] : memref<16x64xf32, #tpu.memory_space<vmem>>, vector<16x64xf32>
    tpu.vector_store %arg6[%c0_13, %c0_14], %20 {strides = array<i32>} : memref<16x64xf32, #tpu.memory_space<vmem>>, vector<16x64xf32>,
    return
  }
  func.func @transform_0(%arg0: i32) -> (i32, i32) {
    %c0_i32 = arith.constant 0 : i32
    %c0_i32_0 = arith.constant 0 : i32
    return %arg0, %c0_i32 : i32, i32
  }
  func.func @transform_1(%arg0: i32) -> (i32, i32) {
    %c0_i32 = arith.constant 0 : i32
    %c0_i32_0 = arith.constant 0 : i32
    %c0_i32_1 = arith.constant 0 : i32
    return %c0_i32, %c0_i32_0 : i32, i32
  }
  func.func @transform_2(%arg0: i32) -> (i32, i32) {
    %c0_i32 = arith.constant 0 : i32
    %c0_i32_0 = arith.constant 0 : i32
    %c0_i32_1 = arith.constant 0 : i32
    return %c0_i32, %c0_i32_0 : i32, i32
  }
  func.func @transform_3(%arg0: i32) -> (i32, i32) {
    %c0_i32 = arith.constant 0 : i32
    %c0_i32_0 = arith.constant 0 : i32
    %c0_i32_1 = arith.constant 0 : i32
    return %c0_i32, %c0_i32_0 : i32, i32
  }
  func.func @transform_4(%arg0: i32) -> (i32, i32) {
    %c0_i32 = arith.constant 0 : i32
    %c0_i32_0 = arith.constant 0 : i32
    %c0_i32_1 = arith.constant 0 : i32
    return %c0_i32, %c0_i32_0 : i32, i32
  }
  func.func @transform_5(%arg0: i32) -> (i32, i32) {
    %c0_i32 = arith.constant 0 : i32
    %c0_i32_0 = arith.constant 0 : i32
    return %arg0, %c0_i32 : i32, i32
  }
}

</mosaic_0001>

<bundles_post_ra>
// kernel: tpu_custom_call.1
= control target key start
LH: loop header
LB: loop body
LE: loop exit
PB: predicated region body
PF: predicated region fallthrough
CT: control target
= control target key end

     0   :  { %v460_v2 = vmov 0   ;;  %vm85_vm0 = vcmask 523264   ;;  %s593_s0 = inlined_call_operand.vmem [shape: f32[16,64], index: 0, kind: input, shape index: {}]   ;;  %s594_s1 = inlined_call_operand.vmem [shape: bf16[64,256], index: 1, kind: input, shape index: {}]   ;;  %s595_s2 = inlined_call_operand.vmem [shape: f32[1,256], index: 2, kind: input, shape index: {}]   ;;  %s596_s3 = inlined_call_operand.vmem [shape: bf16[256,64], index: 3, kind: input, shape index: {}]   ;;  %s597_s4 = inlined_call_operand.vmem [shape: f32[1,64], index: 4, kind: input, shape index: {}]   ;;  %s598_s5 = inlined_call_operand.hbm [shape: f32[16,64], index: 5, kind: output, shape index: {}]  }
   0x1   :  { %v400_v0 = vld [vmem:[%s594_s1 + $0x4] ss:$8 sps:$4 sm:$0xff]   ;;  %v402_v1 = vld [vmem:[%s594_s1] ss:$8 sps:$4 sm:$0xff]   ;;  %121 = vmatprep.mubr.bf16.mxu0 %v460_v2  ;;  %v403_v3 = vld [vmem:[%s594_s1 + $0x14] ss:$8 sps:$4 sm:$0xff]  }
   0x2   :  { %89 = vmatprep.subr.bf16.mxu0 %v400_v0  ;;  %v405_v4 = vld [vmem:[%s594_s1 + $0x10] ss:$8 sps:$4 sm:$0xff]   ;;  %v406_v5 = vld [vmem:[%s594_s1 + $0x24] ss:$8 sps:$4 sm:$0xff]   ;;  %v408_v6 = vld [vmem:[%s594_s1 + $0x20] ss:$8 sps:$4 sm:$0xff]  }
   0x3   :  { %90 = vmatpush1.bf16.msra.mxu0 %v402_v1  ;;  %v409_v7 = vld [vmem:[%s594_s1 + $0x34] ss:$8 sps:$4 sm:$0xff]   ;;  %v412_v8 = vld [vmem:[%s596_s3 + $0x40] sm:$0xff]   ;;  %v414_v10 = vld [vmem:[%s596_s3 + $0x48] sm:$0xff]  }
   0x4   :  { %91 = vmatprep.subr.bf16.mxu0 %v403_v3  ;;  %v413_v9 = vld [vmem:[%s596_s3] sm:$0xff]   ;;  %374 = vmatprep.subr.bf16.mxu1 %v412_v8  ;;  %v411_v11 = vld [vmem:[%s594_s1 + $0x30] ss:$8 sps:$4 sm:$0xff]   ;;  %v415_v13 = vld [vmem:[%s596_s3 + $0x8] sm:$0xff]  }
   0x5   :  { %v22_v12 = vld [vmem:[%s593_s0] sm:$0xff]  ;;  %375 = vmatpush3.bf16.msra.mxu1 %v413_v9  ;;  %v23_v14 = vld [vmem:[%s593_s0 + $0x8] sm:$0xff] }
   0x6   :  { %376 = vmatprep.subr.bf16.mxu1 %v414_v10  ;;  %v24_v15 = vpack.c.bf16 %v23_v14, %v22_v12 }
   0x7   :  { %92 = vmatpush1.bf16.msra.mxu0 %v405_v4 }
   0x8   :  { %93 = vmatprep.subr.bf16.mxu0 %v406_v5 }
   0x9   :  { %377 = vmatpush3.bf16.msra.mxu1 %v415_v13 }
   0xb   :  { %94 = vmatpush1.bf16.msra.mxu0 %v408_v6 }
   0xc   :  { %95 = vmatprep.subr.bf16.mxu0 %v409_v7 }
   0xf   :  { %96 = vmatpush1.bf16.msra.mxu0 %v411_v11 }
  0x12   :  { %356 = vmatmul.mubr.msk.bf16.vlgmr.msra.gmra.mrb[0].mxu0 %vm85_vm0, %v24_v15 }
  0x13   :  { %10 = vsyncpa [#allocation3], 0  ;;  %v416_v16 = vld [vmem:[%s596_s3 + $0x50] sm:$0xff]   ;;  %v418_v18 = vld [vmem:[%s596_s3 + $0x58] sm:$0xff]   ;;  %v35_v28 = vlaneseq  ;;  %s461_s20 = smov [#allocation2]  }
  0x14   :  { %v417_v17 = vld [vmem:[%s596_s3 + $0x10] sm:$0xff]   ;;  %378 = vmatprep.subr.bf16.mxu1 %v416_v16  ;;  %v419_v19 = vld [vmem:[%s596_s3 + $0x18] sm:$0xff]   ;;  %v420_v20 = vld [vmem:[%s596_s3 + $0x60] sm:$0xff]   ;;  %s337_s1 = sshll.u32 %s461_s20, 4  ;;  %s338_s1 = int_to_ptr.vmem [resolvable:$true] %s337_s1 }
  0x15   :  { %379 = vmatpush3.bf16.msra.mxu1 %v417_v17  ;;  %v421_v21 = vld [vmem:[%s596_s3 + $0x20] sm:$0xff]   ;;  %v422_v22 = vld [vmem:[%s596_s3 + $0x68] sm:$0xff]   ;;  %v424_v24 = vld [vmem:[%s596_s3 + $0x70] sm:$0xff]   ;;  %v36_v29 = vshrl.u32 %v35_v28, 7  ;;  %s436_s21 = scalar_lea.vmem %s338_s1, 256  ;;  %p441_p1 = scmp.lt.s32.totalorder %s338_s1, %s338_s1 }
  0x16   :  { %380 = vmatprep.subr.bf16.mxu1 %v418_v18  ;;  %v423_v23 = vld [vmem:[%s596_s3 + $0x28] sm:$0xff]   ;;  %v425_v25 = vld [vmem:[%s596_s3 + $0x30] sm:$0xff]   ;;  %v426_v26 = vld [vmem:[%s596_s3 + $0x78] sm:$0xff]   ;;  %p437_p0 = scmp.ne.s32.totalorder %s338_s1, %s436_s21  ;;  %p442_p2 = scmp.lt.s32.totalorder %s436_s21, %s436_s21 }
  0x17   :  { %v427_v27 = vld [vmem:[%s596_s3 + $0x38] sm:$0xff]   ;;  %v37_v30 = vsub.s32 0, %v36_v29  ;;  %v33_v31 = vld [vmem:[%s595_s2] sm:$0x3]  ;;  %v41_v32 = vsub.s32 1, %v36_v29 }
  0x18   :  { %v357_v2 = vld [vmem:[%s597_s4] ss:$0 sm:$0xff]  ;;  %p443_p3 = por %p442_p2, %p441_p1 }
  0x19   :  { %381 = vmatpush3.bf16.msra.mxu1 %v419_v19  ;;  %v38_v33 = vrot.slane %v33_v31, %v37_v30  ;;  %v42_v34 = vrot.slane %v33_v31, %v41_v32 }
  0x1a   :  { %382 = vmatprep.subr.bf16.mxu1 %v420_v20  ;;  %p444_p4 = pnand %p443_p3, %p437_p0 }
  0x1d   :  { %383 = vmatpush3.bf16.msra.mxu1 %v421_v21 }
  0x1e   :  { %384 = vmatprep.subr.bf16.mxu1 %v422_v22 }
  0x21   :  { %385 = vmatpush3.bf16.msra.mxu1 %v423_v23 }
  0x22   :  { %386 = vmatprep.subr.bf16.mxu1 %v424_v24 }
  0x25   :  { %387 = vmatpush3.bf16.msra.mxu1 %v425_v25 }
  0x26   :  { %388 = vmatprep.subr.bf16.mxu1 %v426_v26 }
  0x29   :  { %389 = vmatpush3.bf16.msra.mxu1 %v427_v27 }
  0xe5   :  { %v123_v35 = vpop.f32.mrb[0].mxu0 }
  0xe6   :  { %v124_v36 = vadd.f32 %v123_v35, %v38_v33  ;;  %v125_v37 = vpop.f32.mrb[1].mxu0 }
  0xe7   :  { %v126_v38 = vadd.f32 %v125_v37, %v42_v34  ;;  %v127_v39 = vpop.f32.mrb[2].mxu0 }
  0xe8   :  { %v136_v40 = vmul.f32 0.70710677, %v124_v36  ;;  %v128_v41 = vadd.f32 %v127_v39, %v38_v33  ;;  %v129_v42 = vpop.f32.mrb[3].mxu0  ;;  %v132_v53 = vmul.f32 0.5, %v124_v36 }
  0xe9   :  { %v137_v43 = vmul.f32 0.70710677, %v126_v38  ;;  %v130_v44 = vadd.f32 %v129_v42, %v42_v34  ;;  %v133_v56 = vmul.f32 0.5, %v126_v38 }
  0xea   :  { %428 = verf.f32 %v136_v40  ;;  %v138_v45 = vmul.f32 0.70710677, %v128_v41  ;;  %v134_v54 = vmul.f32 0.5, %v128_v41 }
  0xeb   :  { %430 = verf.f32 %v137_v43  ;;  %v139_v46 = vmul.f32 0.70710677, %v130_v44  ;;  %v135_v57 = vmul.f32 0.5, %v130_v44 }
  0xec   :  { %432 = verf.f32 %v138_v45 }
  0xed   :  { %434 = verf.f32 %v139_v46 }
  0xf4   :  { %v429_v47 = vpop.eup %428 }
  0xf5   :  { %v431_v48 = vpop.eup %430  ;;  %v144_v49 = vadd.f32 1.0, %v429_v47 }
  0xf6   :  { %v433_v50 = vpop.eup %432  ;;  %v145_v51 = vadd.f32 1.0, %v431_v48 }
  0xf7   :  { %v435_v52 = vpop.eup %434  ;;  %v146_v55 = vadd.f32 1.0, %v433_v50  ;;  %v148_v59 = vmul.f32 %v144_v49, %v132_v53 }
  0xf8   :  { %v147_v58 = vadd.f32 1.0, %v435_v52  ;;  %v149_v61 = vmul.f32 %v145_v51, %v133_v56 }
  0xf9   :  { %v150_v60 = vmul.f32 %v146_v55, %v134_v54 }
  0xfa   :  { %v151_v62 = vmul.f32 %v147_v58, %v135_v57 }
  0xfb   :  { %v152_v63 = vpack.c.bf16 %v150_v60, %v148_v59 }
  0xfc   :  { %v153_v0 = vpack.c.bf16 %v151_v62, %v149_v61 }
  0xfe   :  { %321 = vmatprep.mubr.bf16.mxu1 %v153_v0 }
  0xff   :  { %322 = vmatmul.mubr.bf16.vlgmr.msra.gmra.mrb[0].mxu1 %v152_v63 }
 0x1d2   :  { %v390_v1 = vpop.f32.mrb[0].mxu1 }
 0x1d3   :  { %v391_v3 = vpop.f32.mrb[1].mxu1 }
 0x1d4   :  { %v392_v4 = vadd.f32 %v391_v3, %v390_v1  ;;  %v393_v5 = vpop.f32.mrb[2].mxu1 }
 0x1d5   :  { %v394_v6 = vpop.f32.mrb[3].mxu1 }
 0x1d6   :  { %v324_v7 = vadd.f32 %v392_v4, %v357_v2  ;;  %v395_v8 = vadd.f32 %v394_v6, %v393_v5 }
 0x1d8   :  { %330 = vst.msk [vmem:[#allocation2] sm:$0xff] %vm85_vm0, %v324_v7  ;;  %v327_v9 = vadd.f32 %v395_v8, %v357_v2 }
 0x1da   :  { %331 = vst.msk [vmem:[#allocation2 + $0x8] sm:$0xff] %vm85_vm0, %v327_v9 }
 0x1db   :  { %447 = shalt.err (!%p444_p4)
}
 0x1dc   :  { %s448_s23 = scalar_lea.hbm %s598_s5, 256 }
 0x1dd   :  { %p449_p5 = scmp.ne.s32.totalorder %s598_s5, %s448_s23  ;;  %p452_p6 = scmp.lt.u32.totalorder %s448_s23, %s598_s5 }
 0x1df   :  { %p454_p7 = pnand %p452_p6, %p449_p5 }
 0x1e1   :  { %457 = shalt.err (!%p454_p7)
}
 0x1e2   :  { %s462_s27 = smov 128   ;;  %s463_s28 = smov 8  }
 0x1e3   :  { %343 = dma.vmem_to_hbm [thread:$0]  %s338_s1, 256, %s598_s5, [#allocation3], %s462_s27, %s462_s27, %s463_s28  }
 0x1e4   :  { %458 = dma.done.wait [#allocation3], 256  }
 0x1e5   :  { %459 = vsyncadd [#allocation3], 4294967040 }
 0x1e6   :  { %347 = vsyncpa [#allocation3], 1 }

</bundles_post_ra>
